<compile_context>
chip_gen: v7x
topology: tpu7x:2x2x1
jax: 0.10.0
libtpu: 0.0.40
codegen_flags: <defaults>
</compile_context>

<pallas_src>
import jax
import jax.numpy as jnp
from jax.experimental import pallas as pl
from jax.experimental.pallas import tpu as pltpu

INPUT_SIZE = 32
HIDDEN_SIZE = 32
NUM_DIRECTIONS = 2  # bidirectional=True


# ----------------------------------------------------------------------------
# Kernel: one fused MXU matmul + full-width activations + single-store outputs
# ----------------------------------------------------------------------------
def _bilstm_fused_kernel(xh_ref, w_ref, b_ref, c0_ref, h_ref, c_ref):
    H2 = NUM_DIRECTIONS * HIDDEN_SIZE  # 64 (both directions, per gate)

    # One (1,128) @ (128,256) MXU call replaces 4 separate K=32 matmuls.
    gates = (jnp.dot(xh_ref[...], w_ref[...], preferred_element_type=jnp.float32)
             + b_ref[...])                                    # (1, 4*H2) = (1, 256)

    # Two full-width EUP activations + lane-mask select (gate layout is
    # [i | f | g | o], each block 2H wide; only the g block takes tanh).
    lane = jax.lax.broadcasted_iota(jnp.int32, gates.shape, 1)
    is_g = (lane >= 2 * H2) & (lane < 3 * H2)
    act = jnp.where(is_g, jnp.tanh(gates), jax.nn.sigmoid(gates))  # (1, 256)

    i_g = act[:, 0 * H2:1 * H2]
    f_g = act[:, 1 * H2:2 * H2]
    g_g = act[:, 2 * H2:3 * H2]
    o_g = act[:, 3 * H2:4 * H2]

    c_new = f_g * c0_ref[...] + i_g * g_g                     # (1, 64) fwd|bwd
    h_new = o_g * jnp.tanh(c_new)                             # (1, 64) fwd|bwd

    h_ref[...] = h_new                                        # single store
    c_ref[...] = c_new                                        # single store


# ----------------------------------------------------------------------------
# Host-side wrapper (matches Encoder.forward signature semantics)
# ----------------------------------------------------------------------------
def encoder_forward(inputs, hidden, fused_params):
    """Returns (output, (h_n, c_n)) with PyTorch shapes:
       output: (1, 1, 2H); h_n, c_n: (2, 1, H)."""
    w_fused, b_fused = fused_params
    h0, c0 = hidden                                  # each (2, 1, H)

    x = inputs.reshape(1, INPUT_SIZE).astype(jnp.float32)     # inputs.view(1,1,I)
    h0f = h0.reshape(NUM_DIRECTIONS, HIDDEN_SIZE)
    # Fused MXU input row: [x, h_fwd, x, h_bwd]  -> (1, 128)
    xh = jnp.concatenate([x, h0f[0:1], x, h0f[1:2]], axis=-1)
    # Fused cell state: [c_fwd, c_bwd]            -> (1, 64)
    c0f = c0.reshape(1, NUM_DIRECTIONS * HIDDEN_SIZE)

    h_new, c_new = pl.pallas_call(
        _bilstm_fused_kernel,
        out_shape=(
            jax.ShapeDtypeStruct((1, NUM_DIRECTIONS * HIDDEN_SIZE), jnp.float32),
            jax.ShapeDtypeStruct((1, NUM_DIRECTIONS * HIDDEN_SIZE), jnp.float32),
        ),
        in_specs=[pl.BlockSpec(memory_space=pltpu.MemorySpace.VMEM)] * 4,
        out_specs=(pl.BlockSpec(memory_space=pltpu.MemorySpace.VMEM),) * 2,
    )(xh, w_fused, b_fused, c0f)

    output = h_new.reshape(1, 1, NUM_DIRECTIONS * HIDDEN_SIZE)  # concat fwd|bwd
    h_n = h_new.reshape(NUM_DIRECTIONS, 1, HIDDEN_SIZE)
    c_n = c_new.reshape(NUM_DIRECTIONS, 1, HIDDEN_SIZE)
    return output, (h_n, c_n)


# ----------------------------------------------------------------------------
# Parameter init (PyTorch nn.LSTM layout) + one-time host-side fusion/repack
# ----------------------------------------------------------------------------
def init_params(key, input_size, hidden_size):
    """PyTorch-shaped params: per direction weight_ih (4H,I), weight_hh (4H,H),
    bias_ih (4H,), bias_hh (4H,); init U(-1/sqrt(H), 1/sqrt(H))."""
    k = 1.0 / (hidden_size ** 0.5)
    keys = jax.random.split(key, 8)
    wih = [jax.random.uniform(keys[d], (4 * hidden_size, input_size),
                              minval=-k, maxval=k, dtype=jnp.float32)
           for d in range(NUM_DIRECTIONS)]
    whh = [jax.random.uniform(keys[2 + d], (4 * hidden_size, hidden_size),
                              minval=-k, maxval=k, dtype=jnp.float32)
           for d in range(NUM_DIRECTIONS)]
    bih = [jax.random.uniform(keys[4 + d], (4 * hidden_size,),
                              minval=-k, maxval=k, dtype=jnp.float32)
           for d in range(NUM_DIRECTIONS)]
    bhh = [jax.random.uniform(keys[6 + d], (4 * hidden_size,),
                              minval=-k, maxval=k, dtype=jnp.float32)
           for d in range(NUM_DIRECTIONS)]
    return wih, whh, bih, bhh


def fuse_params(params):
    """One-time repack into a block-diagonal (128, 256) weight and (1, 256)
    pre-summed bias. Rows: [x, h_fwd | x, h_bwd]. Cols (gate-major):
    [i_fwd,i_bwd | f_fwd,f_bwd | g_fwd,g_bwd | o_fwd,o_bwd]."""
    wih, whh, bih, bhh = params
    I, H = INPUT_SIZE, HIDDEN_SIZE
    K = NUM_DIRECTIONS * (I + H)         # 128
    N = NUM_DIRECTIONS * 4 * H           # 256
    W = jnp.zeros((K, N), jnp.float32)
    b = jnp.zeros((1, N), jnp.float32)
    for d in range(NUM_DIRECTIONS):
        row0 = d * (I + H)
        for g in range(4):  # PyTorch gate order (i, f, g, o)
            col0 = g * NUM_DIRECTIONS * H + d * H
            W = W.at[row0:row0 + I, col0:col0 + H].set(wih[d][g * H:(g + 1) * H, :].T)
            W = W.at[row0 + I:row0 + I + H, col0:col0 + H].set(whh[d][g * H:(g + 1) * H, :].T)
            b = b.at[0, col0:col0 + H].set(bih[d][g * H:(g + 1) * H] + bhh[d][g * H:(g + 1) * H])
    return W, b


def init_hidden(hidden_size):
    # Encoder.init_hidden(): zeros of shape (1 + bidirectional, 1, H)
    z = jnp.zeros((NUM_DIRECTIONS, 1, hidden_size), jnp.float32)
    return z, z


# ----------------------------------------------------------------------------
# Pure-JAX reference (uses the original per-direction PyTorch-layout params,
# so it also validates the host-side weight repack).
# ----------------------------------------------------------------------------
def _reference_forward(inputs, hidden, params):
    wih, whh, bih, bhh = params
    h0, c0 = hidden
    x = inputs.reshape(1, INPUT_SIZE)
    H = HIDDEN_SIZE
    hs, cs = [], []
    for d in range(NUM_DIRECTIONS):
        g = x @ wih[d].T + h0[d] @ whh[d].T + bih[d][None, :] + bhh[d][None, :]
        i = jax.nn.sigmoid(g[:, 0:H])
        f = jax.nn.sigmoid(g[:, H:2 * H])
        gg = jnp.tanh(g[:, 2 * H:3 * H])
        o = jax.nn.sigmoid(g[:, 3 * H:4 * H])
        c = f * c0[d] + i * gg
        h = o * jnp.tanh(c)
        hs.append(h)
        cs.append(c)
    out = jnp.concatenate(hs, axis=-1).reshape(1, 1, 2 * H)
    return out, (jnp.stack(hs), jnp.stack(cs))


if __name__ == "__main__":
    key = jax.random.PRNGKey(0)
    k_param, k_x = jax.random.split(key)

    params = init_params(k_param, INPUT_SIZE, HIDDEN_SIZE)
    fused = fuse_params(params)                   # one-time host-side repack
    hidden0 = init_hidden(HIDDEN_SIZE)
    x = jax.random.normal(k_x, (1, 1, INPUT_SIZE), dtype=jnp.float32)

    output, (h_n, c_n) = encoder_forward(x, hidden0, fused)
    jax.block_until_ready((output, h_n, c_n))

    # sanity-check against pure-JAX reference (unfused math)
    ref_out, (ref_h, ref_c) = _reference_forward(x, hidden0, params)
    assert output.shape == (1, 1, 2 * HIDDEN_SIZE)
    assert h_n.shape == (NUM_DIRECTIONS, 1, HIDDEN_SIZE)
    assert c_n.shape == (NUM_DIRECTIONS, 1, HIDDEN_SIZE)
    assert jnp.allclose(output, ref_out, atol=1e-5)
    assert jnp.allclose(h_n, ref_h, atol=1e-5)
    assert jnp.allclose(c_n, ref_c, atol=1e-5)

    print("KERNEL_OK")
</pallas_src>

<mosaic_0001>
module attributes {stable_mosaic.version = 11 : i64} {
  func.func @_bilstm_fused_kernel(%arg0: memref<1x128xf32, #tpu.memory_space<vmem>>, %arg1: memref<128x256xf32, #tpu.memory_space<vmem>>, %arg2: memref<1x256xf32, #tpu.memory_space<vmem>>, %arg3: memref<1x64xf32, #tpu.memory_space<vmem>>, %arg4: memref<1x64xf32, #tpu.memory_space<vmem>>, %arg5: memref<1x64xf32, #tpu.memory_space<vmem>>) attributes {dimension_semantics = [], scalar_prefetch = 0 : i64, scratch_operands = 0 : i64, tpu.core_type = #tpu.core_type<tc>} {
    %c0 = arith.constant 0 : index
    %c0_0 = arith.constant 0 : index
    %0 = vector.load %arg0[%c0, %c0_0] : memref<1x128xf32, #tpu.memory_space<vmem>>, vector<1x128xf32>
    %c0_1 = arith.constant 0 : index
    %c0_2 = arith.constant 0 : index
    %1 = vector.load %arg1[%c0_1, %c0_2] : memref<128x256xf32, #tpu.memory_space<vmem>>, vector<128x256xf32>
    %cst = arith.constant dense<0.000000e+00> : vector<1x256xf32>
    %2 = tpu.matmul %0, %1, %cst {dimension_numbers = #tpu.dot_dimension_numbers<[1], [0], [0], [1], [0, 0, 1, 1], [], []>} : vector<1x128xf32>, vector<128x256xf32>, vector<1x256xf32> -> vector<1x256xf32>
    %c0_3 = arith.constant 0 : index
    %c0_4 = arith.constant 0 : index
    %3 = vector.load %arg2[%c0_3, %c0_4] : memref<1x256xf32, #tpu.memory_space<vmem>>, vector<1x256xf32>
    %4 = arith.addf %2, %3 : vector<1x256xf32>
    %5 = tpu.iota {dimensions = array<i32: 1>} : vector<1x256xi32>
    %c128_i32 = arith.constant 128 : i32
    %6 = vector.broadcast %c128_i32 : i32 to vector<1x256xi32>
    %7 = arith.cmpi sge, %5, %6 : vector<1x256xi32>
    %c192_i32 = arith.constant 192 : i32
    %8 = vector.broadcast %c192_i32 : i32 to vector<1x256xi32>
    %9 = arith.cmpi slt, %5, %8 : vector<1x256xi32>
    %10 = arith.andi %7, %9 : vector<1x256xi1>
    %11 = math.tanh %4 : vector<1x256xf32>
    %12 = arith.negf %4 : vector<1x256xf32>
    %13 = math.exp %12 : vector<1x256xf32>
    %cst_5 = arith.constant 1.000000e+00 : f32
    %14 = vector.broadcast %cst_5 : f32 to vector<1x256xf32>
    %15 = arith.addf %14, %13 : vector<1x256xf32>
    %16 = arith.divf %14, %15 : vector<1x256xf32>
    %17 = arith.select %10, %11, %16 : vector<1x256xi1>, vector<1x256xf32>
    %18 = vector.extract_strided_slice %17 {offsets = [0, 0], sizes = [1, 64], strides = [1, 1]} : vector<1x256xf32> to vector<1x64xf32>
    %19 = vector.extract_strided_slice %17 {offsets = [0, 64], sizes = [1, 64], strides = [1, 1]} : vector<1x256xf32> to vector<1x64xf32>
    %20 = vector.extract_strided_slice %17 {offsets = [0, 128], sizes = [1, 64], strides = [1, 1]} : vector<1x256xf32> to vector<1x64xf32>
    %21 = vector.extract_strided_slice %17 {offsets = [0, 192], sizes = [1, 64], strides = [1, 1]} : vector<1x256xf32> to vector<1x64xf32>
    %c0_6 = arith.constant 0 : index
    %c0_7 = arith.constant 0 : index
    %22 = vector.load %arg3[%c0_6, %c0_7] : memref<1x64xf32, #tpu.memory_space<vmem>>, vector<1x64xf32>
    %23 = arith.mulf %19, %22 : vector<1x64xf32>
    %24 = arith.mulf %18, %20 : vector<1x64xf32>
    %25 = arith.addf %23, %24 : vector<1x64xf32>
    %26 = math.tanh %25 : vector<1x64xf32>
    %27 = arith.mulf %21, %26 : vector<1x64xf32>
    %c0_8 = arith.constant 0 : index
    %c0_9 = arith.constant 0 : index
    %28 = vector.load %arg4[%c0_8, %c0_9] : memref<1x64xf32, #tpu.memory_space<vmem>>, vector<1x64xf32>
    tpu.vector_store %arg4[%c0_8, %c0_9], %27 {strides = array<i32>} : memref<1x64xf32, #tpu.memory_space<vmem>>, vector<1x64xf32>,
    %c0_10 = arith.constant 0 : index
    %c0_11 = arith.constant 0 : index
    %29 = vector.load %arg5[%c0_10, %c0_11] : memref<1x64xf32, #tpu.memory_space<vmem>>, vector<1x64xf32>
    tpu.vector_store %arg5[%c0_10, %c0_11], %25 {strides = array<i32>} : memref<1x64xf32, #tpu.memory_space<vmem>>, vector<1x64xf32>,
    return
  }
}

</mosaic_0001>

<bundles_post_ra>
// kernel: tpu_custom_call.1
= control target key start
LH: loop header
LB: loop body
LE: loop exit
PB: predicated region body
PF: predicated region fallthrough
CT: control target
= control target key end

     0   :  { %11 = vsyncpa [#allocation3], 0  ;;  %s503_s0 = inlined_call_operand.hbm [shape: f32[1,128], index: 0, kind: input, shape index: {}]   ;;  %s504_s1 = inlined_call_operand.hbm [shape: f32[128,256], index: 1, kind: input, shape index: {}]   ;;  %s505_s2 = inlined_call_operand.vmem [shape: f32[1,256], index: 2, kind: input, shape index: {}]   ;;  %s506_s3 = inlined_call_operand.vmem [shape: f32[1,64], index: 3, kind: input, shape index: {}]   ;;  %s507_s4 = inlined_call_operand.hbm [shape: f32[1,64], index: 4, kind: output, shape index: {0}]   ;;  %s508_s5 = inlined_call_operand.hbm [shape: f32[1,64], index: 5, kind: output, shape index: {1}]  }
   0x1   :  { %12 = vsyncpa [#allocation6], 0 }
   0x2   :  { %13 = vsyncpa [#allocation4], 0 }
   0x3   :  { %14 = vsyncpa [#allocation9], 0  ;;  %s398_s18 = smov [#allocation2]   ;;  %s399_s20 = smov [#allocation5]  }
   0x4   :  { %s21_s19 = sshll.u32 %s398_s18, 4  ;;  %s30_s21 = sshll.u32 %s399_s20, 4  ;;  %s22_s19 = int_to_ptr.vmem [resolvable:$true] %s21_s19  ;;  %s436_s21 = int_to_ptr.vmem [resolvable:$true] %s30_s21 }
   0x5   :  { %s302_s24 = scalar_lea.hbm %s503_s0, 16 }
   0x6   :  { %p303_p0 = scmp.ne.s32.totalorder %s503_s0, %s302_s24  ;;  %p306_p1 = scmp.lt.u32.totalorder %s302_s24, %s503_s0 }
   0x8   :  { %p308_p2 = pnand %p306_p1, %p303_p0 }
   0xa   :  { %311 = shalt.err (!%p308_p2)
}
   0xb   :  { %s312_s29 = scalar_lea.vmem %s22_s19, 16  ;;  %s316_s30 = scalar_lea.vmem %s22_s19, 32 }
   0xc   :  { %p313_p3 = scmp.ne.s32.totalorder %s22_s19, %s312_s29  ;;  %p317_p4 = scmp.lt.s32.totalorder %s22_s19, %s22_s19 }
   0xd   :  { %p318_p5 = scmp.lt.s32.totalorder %s316_s30, %s312_s29 }
   0xf   :  { %p319_p6 = por %p318_p5, %p317_p4 }
  0x11   :  { %p320_p7 = pnand %p319_p6, %p313_p3 }
  0x13   :  { %323 = shalt.err (!%p320_p7)
}
  0x14   :  { %24 = dma.hbm_to_vmem [thread:$0]  %s503_s0, 16, %s22_s19, [#allocation3]  }
  0x15   :  { %s324_s10 = scalar_lea.hbm %s504_s1, 4096 }
  0x16   :  { %p325_p8 = scmp.ne.s32.totalorder %s504_s1, %s324_s10  ;;  %p328_p9 = scmp.lt.u32.totalorder %s324_s10, %s504_s1 }
  0x18   :  { %p330_p10 = pnand %p328_p9, %p325_p8 }
  0x1a   :  { %333 = shalt.err (!%p330_p10)
}
  0x1b   :  { %s334_s15 = scalar_lea.vmem %s436_s21, 4096  ;;  %p339_p12 = scmp.lt.s32.totalorder %s436_s21, %s436_s21 }
  0x1c   :  { %p335_p11 = scmp.ne.s32.totalorder %s436_s21, %s334_s15  ;;  %p340_p13 = scmp.lt.s32.totalorder %s334_s15, %s334_s15 }
  0x1e   :  { %p341_p0 = por %p340_p13, %p339_p12 }
  0x20   :  { %p342_p1 = pnand %p341_p0, %p335_p11 }
  0x22   :  { %345 = shalt.err (!%p342_p1)
}
  0x23   :  { %s400_s0 = smov 256   ;;  %s401_s16 = smov 16  }
  0x24   :  { %36 = dma.hbm_to_vmem [thread:$0]  %s504_s1, 4096, %s436_s21, [#allocation6], %s400_s0, %s400_s0, %s401_s16  }
  0x25   :  { %390 = dma.done.wait [#allocation3], 16  }
  0x26   :  { %391 = vsyncadd [#allocation3], 4294967280 }
  0x27   :  { %392 = dma.done.wait [#allocation6], 4096  }
  0x28   :  { %393 = vsyncadd [#allocation6], 4294963200  ;;  %v402_v0 = vmov 0.0   ;;  %v49_v1 = vld [vmem:[#allocation5 + $0x8] sm:$0xff]  ;;  %v51_v2 = vld [vmem:[#allocation5 + $0x18] sm:$0xff]  ;;  %s403_s20 = smov 64   ;;  %v82_v51 = vlaneseq }
  0x29   :  { %156 = vmatprep.mubr.f32.mxu0 %v402_v0  ;;  %v48_v3 = vld [vmem:[#allocation5] sm:$0xff]  ;;  %v250_v4 = vpack.c.bf16 %v51_v2, %v49_v1  ;;  %v50_v5 = vld [vmem:[#allocation5 + $0x10] sm:$0xff]  ;;  %v53_v6 = vld [vmem:[#allocation5 + $0x28] sm:$0xff]  ;;  %vm210_vm1 = vcmask 516096   ;;  %s405_s23 = smov [#allocation8]  }
  0x2a   :  { %v55_v7 = vld [vmem:[#allocation5 + $0x38] sm:$0xff]  ;;  %v252_v8 = vpack.c.bf16 %v50_v5, %v48_v3  ;;  %v52_v10 = vld [vmem:[#allocation5 + $0x20] sm:$0xff]  ;;  %v54_v11 = vld [vmem:[#allocation5 + $0x30] sm:$0xff]  ;;  %v83_v52 = vshrl.u32 %v82_v51, 7  ;;  %s233_s24 = sshll.u32 %s405_s23, 4  ;;  %s234_s24 = int_to_ptr.vmem [resolvable:$true] %s233_s24 }
  0x2b   :  { %v254_v9 = vpack.c.bf16 %v55_v7, %v53_v6  ;;  %v57_v12 = vld [vmem:[#allocation5 + $0x48] sm:$0xff]  ;;  %251 = vmatprep.subr.bf16.mxu0 %v250_v4  ;;  %v59_v13 = vld [vmem:[#allocation5 + $0x58] sm:$0xff]  ;;  %v256_v14 = vpack.c.bf16 %v54_v11, %v52_v10  ;;  %v56_v16 = vld [vmem:[#allocation5 + $0x40] sm:$0xff]  ;;  %v164_v4 = vand.u32 127, %v82_v51 }
  0x2c   :  { %253 = vmatpush1.bf16.msra.mxu0 %v252_v8  ;;  %v258_v15 = vpack.c.bf16 %v59_v13, %v57_v12  ;;  %v58_v17 = vld [vmem:[#allocation5 + $0x50] sm:$0xff]  ;;  %v61_v18 = vld [vmem:[#allocation5 + $0x68] sm:$0xff]  ;;  %v63_v19 = vld [vmem:[#allocation5 + $0x78] sm:$0xff]  ;;  %v84_v53 = vsub.s32 0, %v83_v52  ;;  %v88_v55 = vsub.s32 1, %v83_v52 }
  0x2d   :  { %255 = vmatprep.subr.bf16.mxu0 %v254_v9  ;;  %v260_v20 = vpack.c.bf16 %v58_v17, %v56_v16  ;;  %v262_v21 = vpack.c.bf16 %v63_v19, %v61_v18  ;;  %v60_v22 = vld [vmem:[#allocation5 + $0x60] sm:$0xff]  ;;  %v62_v23 = vld [vmem:[#allocation5 + $0x70] sm:$0xff]  ;;  %v65_v24 = vld [vmem:[#allocation5 + $0x88] sm:$0xff]  ;;  %v165_v5 = vadd.s32 128, %v164_v4 }
  0x2e   :  { %v67_v25 = vld [vmem:[#allocation5 + $0x98] sm:$0xff]  ;;  %v249_v26 = vld [vmem:[%s506_s3] ss:$0 sm:$0xff]  ;;  %v264_v27 = vpack.c.bf16 %v62_v23, %v60_v22  ;;  %v64_v29 = vld [vmem:[#allocation5 + $0x80] sm:$0xff] }
  0x2f   :  { %194 = vrot.lane.b32.xlu0 %v249_v26, %s403_s20  ;;  %v266_v28 = vpack.c.bf16 %v67_v25, %v65_v24  ;;  %v66_v30 = vld [vmem:[#allocation5 + $0x90] sm:$0xff]  ;;  %v69_v31 = vld [vmem:[#allocation5 + $0xa8] sm:$0xff]  ;;  %v71_v32 = vld [vmem:[#allocation5 + $0xb8] sm:$0xff]  ;;  %vm169_vm0 = vcmp.lt.s32.totalorder %v165_v5, 192 }
  0x30   :  { %257 = vmatpush1.bf16.msra.mxu0 %v256_v14  ;;  %v268_v33 = vpack.c.bf16 %v66_v30, %v64_v29  ;;  %v270_v34 = vpack.c.bf16 %v71_v32, %v69_v31  ;;  %v68_v35 = vld [vmem:[#allocation5 + $0xa0] sm:$0xff]  ;;  %v70_v36 = vld [vmem:[#allocation5 + $0xb0] sm:$0xff]  ;;  %v73_v37 = vld [vmem:[#allocation5 + $0xc8] sm:$0xff] }
  0x31   :  { %259 = vmatprep.subr.bf16.mxu0 %v258_v15  ;;  %v75_v38 = vld [vmem:[#allocation5 + $0xd8] sm:$0xff]  ;;  %v272_v39 = vpack.c.bf16 %v70_v36, %v68_v35  ;;  %v72_v41 = vld [vmem:[#allocation5 + $0xc0] sm:$0xff]  ;;  %v74_v42 = vld [vmem:[#allocation5 + $0xd0] sm:$0xff] }
  0x32   :  { %v274_v40 = vpack.c.bf16 %v75_v38, %v73_v37  ;;  %v77_v43 = vld [vmem:[#allocation5 + $0xe8] sm:$0xff]  ;;  %v79_v44 = vld [vmem:[#allocation5 + $0xf8] sm:$0xff]  ;;  %v276_v45 = vpack.c.bf16 %v74_v42, %v72_v41  ;;  %v76_v47 = vld [vmem:[#allocation5 + $0xe0] sm:$0xff] }
  0x33   :  { %v278_v46 = vpack.c.bf16 %v79_v44, %v77_v43  ;;  %v78_v48 = vld [vmem:[#allocation5 + $0xf0] sm:$0xff]  ;;  %v47_v50 = vld [vmem:[#allocation2] sm:$0x1] }
  0x34   :  { %261 = vmatpush1.bf16.msra.mxu0 %v260_v20  ;;  %v280_v49 = vpack.c.bf16 %v78_v48, %v76_v47  ;;  %v80_v54 = vld [vmem:[%s505_s2] sm:$0x3]  ;;  %s404_s2 = smov [#allocation7]  }
  0x35   :  { %263 = vmatprep.subr.bf16.mxu0 %v262_v21  ;;  %v85_v56 = vrot.slane %v80_v54, %v84_v53  ;;  %v89_v57 = vrot.slane %v80_v54, %v88_v55  ;;  %s223_s22 = sshll.u32 %s404_s2, 4  ;;  %s224_s22 = int_to_ptr.vmem [resolvable:$true] %s223_s22 }
  0x36   :  { %s346_s25 = scalar_lea.vmem %s224_s22, 16  ;;  %s350_s26 = scalar_lea.vmem %s224_s22, 32 }
  0x37   :  { %p347_p2 = scmp.ne.s32.totalorder %s224_s22, %s346_s25  ;;  %p351_p3 = scmp.lt.s32.totalorder %s224_s22, %s224_s22 }
  0x38   :  { %265 = vmatpush1.bf16.msra.mxu0 %v264_v27  ;;  %p352_p4 = scmp.lt.s32.totalorder %s350_s26, %s346_s25 }
  0x39   :  { %267 = vmatprep.subr.bf16.mxu0 %v266_v28 }
  0x3a   :  { %p353_p5 = por %p352_p4, %p351_p3 }
  0x3c   :  { %269 = vmatpush1.bf16.msra.mxu0 %v268_v33  ;;  %p354_p6 = pnand %p353_p5, %p347_p2 }
  0x3d   :  { %271 = vmatprep.subr.bf16.mxu0 %v270_v34 }
  0x40   :  { %273 = vmatpush1.bf16.msra.mxu0 %v272_v39 }
  0x41   :  { %275 = vmatprep.subr.bf16.mxu0 %v274_v40 }
  0x44   :  { %277 = vmatpush1.bf16.msra.mxu0 %v276_v45 }
  0x45   :  { %279 = vmatprep.subr.bf16.mxu0 %v278_v46 }
  0x48   :  { %281 = vmatpush1.bf16.msra.mxu0 %v280_v49 }
  0x4b   :  { %157 = vmatmul.mubr.f32.vlgmr.msra.gmra.mrb[0].mxu0 %v47_v50 }
  0xa1   :  { %v195_v11 = vpop.permute.xlu0 %194 }
 0x11e   :  { %v158_v58 = vpop.f32.mrb[0].mxu0 }
 0x11f   :  { %v159_v59 = vadd.f32 %v158_v58, %v85_v56  ;;  %v160_v60 = vpop.f32.mrb[1].mxu0 }
 0x120   :  { %v161_v61 = vadd.f32 %v160_v60, %v89_v57 }
 0x121   :  { %v247_v62 = vmul.f32 -1.442695, %v159_v59 }
 0x122   :  { %v248_v63 = vmul.f32 -1.442695, %v161_v61 }
 0x123   :  { %290 = vpow2.f32 %v247_v62 }
 0x124   :  { %292 = vpow2.f32 %v248_v63 }
 0x125   :  { %294 = vtanh.f32 %v161_v61 }
 0x12d   :  { %v291_v0 = vpop.eup %290 }
 0x12e   :  { %v293_v1 = vpop.eup %292  ;;  %v180_v2 = vadd.f32 1.0, %v291_v0 }
 0x12f   :  { %v181_v3 = vadd.f32 1.0, %v293_v1  ;;  %v295_v6 = vpop.eup %294 }
 0x131   :  { %296 = vrcp.f32 %v181_v3 }
 0x132   :  { %298 = vrcp.f32 %v180_v2 }
 0x13b   :  { %v297_v7 = vpop.eup %296 }
 0x13c   :  { %v299_v8 = vpop.eup %298  ;;  %v187_v9 = vsel %vm169_vm0, %v295_v6, %v297_v7 }
 0x13d   :  { %v198_v10 = vmul.f32 %v299_v8, %v187_v9  ;;  %v197_v12 = vmul.f32 %v299_v8, %v195_v11 }
 0x13f   :  { %200 = vrot.lane.b32.xlu0 %v198_v10, %s403_s20 }
 0x1b1   :  { %v201_v13 = vpop.permute.xlu0 %200 }
 0x1b2   :  { %v203_v14 = vadd.f32 %v201_v13, %v197_v12 }
 0x1b4   :  { %300 = vtanh.f32 %v203_v14 }
 0x1be   :  { %v301_v15 = vpop.eup %300 }
 0x1bf   :  { %v205_v16 = vmul.f32 %v301_v15, %v187_v9 }
 0x1c1   :  { %207 = vrot.lane.b32.xlu1 %v205_v16, %s403_s20 }
 0x1c5   :  { %213 = vrot.lane.b32.xlu1 %v203_v14, %s403_s20 }
 0x233   :  { %v208_v17 = vpop.permute.xlu1 %207 }
 0x234   :  { %211 = vst.msk [vmem:[#allocation7] sm:$0x1] %vm210_vm1, %v208_v17 }
 0x235   :  { %357 = shalt.err (!%p354_p6)
}
 0x236   :  { %s358_s29 = scalar_lea.hbm %s507_s4, 16 }
 0x237   :  { %p359_p7 = scmp.ne.s32.totalorder %s507_s4, %s358_s29  ;;  %p362_p8 = scmp.lt.u32.totalorder %s358_s29, %s507_s4 }
 0x239   :  { %p364_p9 = pnand %p362_p8, %p359_p7 }
 0x23b   :  { %367 = shalt.err (!%p364_p9)
}
 0x23c   :  { %226 = dma.vmem_to_hbm [thread:$0]  %s224_s22, 16, %s507_s4, [#allocation4]   ;;  %v214_v18 = vpop.permute.xlu1 %213 }
 0x23d   :  { %216 = vst.msk [vmem:[#allocation8] sm:$0x1] %vm210_vm1, %v214_v18  ;;  %s368_s11 = scalar_lea.vmem %s234_s24, 16  ;;  %s372_s12 = scalar_lea.vmem %s234_s24, 32 }
 0x23e   :  { %p369_p10 = scmp.ne.s32.totalorder %s234_s24, %s368_s11  ;;  %p373_p11 = scmp.lt.s32.totalorder %s234_s24, %s234_s24 }
 0x23f   :  { %p374_p12 = scmp.lt.s32.totalorder %s372_s12, %s368_s11 }
 0x241   :  { %p375_p13 = por %p374_p12, %p373_p11 }
 0x243   :  { %p376_p0 = pnand %p375_p13, %p369_p10 }
 0x245   :  { %379 = shalt.err (!%p376_p0)
}
 0x246   :  { %s380_s15 = scalar_lea.hbm %s508_s5, 16 }
 0x247   :  { %p381_p1 = scmp.ne.s32.totalorder %s508_s5, %s380_s15  ;;  %p384_p2 = scmp.lt.u32.totalorder %s380_s15, %s508_s5 }
 0x249   :  { %p386_p3 = pnand %p384_p2, %p381_p1 }
 0x24b   :  { %389 = shalt.err (!%p386_p3)
}
 0x24c   :  { %236 = dma.vmem_to_hbm [thread:$0]  %s234_s24, 16, %s508_s5, [#allocation9]  }
 0x24d   :  { %394 = dma.done.wait [#allocation4], 16  }
 0x24e   :  { %395 = vsyncadd [#allocation4], 4294967280 }
 0x24f   :  { %396 = dma.done.wait [#allocation9], 16  }
 0x250   :  { %397 = vsyncadd [#allocation9], 4294967280 }
 0x251   :  { %243 = vsyncpa [#allocation3], 1 }
 0x252   :  { %244 = vsyncpa [#allocation6], 1 }
 0x253   :  { %245 = vsyncpa [#allocation4], 1 }
 0x254   :  { %246 = vsyncpa [#allocation9], 1 }

</bundles_post_ra>
